<compile_context>
chip_gen: v7x
topology: tpu7x:2x2x1
jax: 0.10.0
libtpu: 0.0.40
codegen_flags: <defaults>
</compile_context>

<pallas_src>
import math
import numpy as np
import jax
import jax.numpy as jnp
from jax.experimental import pallas as pl
from jax.experimental.pallas import tpu as pltpu


# ----------------------------------------------------------------------------
# Wrapper + kernel
# ----------------------------------------------------------------------------
def hf_conv(x, kernel_weight, kernel_factor, bias=None, *,
            stride=1, padding=0, dilation=1, groups=1, target_lanes=2048):
    """x: (B, C, H, W) NCHW.  kernel_weight: (N, C/groups, kh, kw).
    kernel_factor: (N, 1, 1, 1).  bias: (N,) or None."""
    # TODO(synk): groups > 1 and stride > 1 not implemented (module defaults are 1).
    assert groups == 1 and stride == 1

    w = (kernel_weight * kernel_factor).astype(x.dtype)        # (N, C, kh, kw)
    N, Cg, kh, kw = w.shape
    B, C, H, W = x.shape
    assert Cg == C
    KK = kh * kw

    Hp = H + 2 * padding
    Wp = W + 2 * padding
    Ho = Hp - dilation * (kh - 1)
    Wo = Wp - dilation * (kw - 1)
    assert Ho > 0 and Wo > 0

    # ---- row-tile selection (flat spatial on lanes) --------------------------
    LANE = 128
    # th must be a multiple of q so that TILE = th*Wp is a multiple of 128
    q = LANE // math.gcd(Wp, LANE)
    # shrink the lane target for large C so the in-kernel working set stays small
    tl = max(LANE, min(int(target_lanes), (8 << 20) // (4 * (4 * C + 2 * N))))
    th = max(q, (tl // Wp) // q * q)
    th = min(th, pl.cdiv(Ho, q) * q)            # do not over-pad small images
    n_tiles = pl.cdiv(Ho, th)
    # guarantee >= 4 parallel grid steps so v7x's two TensorCores stay busy
    while B * n_tiles < 4:
        new_th = (th // 2) // q * q
        if new_th < q:
            break
        th = new_th
        n_tiles = pl.cdiv(Ho, th)
    Ho_pad = n_tiles * th
    TILE = th * Wp                                   # flat output positions / step
    WIN = TILE + (kh - 1) * dilation * Wp + (kw - 1) * dilation
    L_need = (n_tiles - 1) * TILE + WIN              # last flat input index read
    Hp_rows = max(Hp, pl.cdiv(L_need, Wp))           # padded input rows to store
    L = Hp_rows * Wp

    # One pad only: conv padding + tail rows so every in-kernel window is in-bounds.
    x_p = jnp.pad(x, ((0, 0), (0, 0),
                      (padding, padding + (Hp_rows - Hp)),
                      (padding, padding)))
    x_flat = x_p.reshape(B, C, L)                    # free reshape, spatial on lanes

    # Filter taps as (kh*kw, N, C): one tiny (N, C) matmul per tap in the kernel.
    w_taps = jnp.transpose(w, (2, 3, 0, 1)).reshape(KK, N, C)
    b_col = (jnp.zeros((N,), jnp.float32) if bias is None
             else bias.astype(jnp.float32)).reshape(N, 1)      # f32 (f32 accumulator)

    def kernel(x_ref, w_ref, b_ref, o_ref):
        # x_ref: (C, L) resident image  w_ref: (KK, N, C)  b_ref: (N, 1)
        # o_ref: (N, TILE) flat (Wp-strided) output rows for this row tile
        r = pl.program_id(1)
        base = pl.multiple_of(r * TILE, LANE)        # TILE % 128 == 0 by construction
        window = x_ref[:, pl.ds(base, WIN)]          # (C, WIN) aligned dynamic load
        acc = jnp.zeros((N, TILE), jnp.float32)
        for i in range(kh):
            for j in range(kw):
                off = (i * Wp + j) * dilation        # static lane shift of the window
                patch = window[:, off:off + TILE]    # (C, TILE)
                acc = acc + jnp.dot(w_ref[i * kw + j], patch,
                                    preferred_element_type=jnp.float32)
        o_ref[...] = (acc + b_ref[...]).astype(o_ref.dtype)

    item = x.dtype.itemsize
    vmem_need = (2 * C * L * item                    # resident image (double buffered)
                 + 2 * N * TILE * item               # output blocks
                 + 2 * KK * N * C * item + 256       # weights + bias
                 + (C * WIN + 3 * C * TILE + 2 * N * TILE) * 4)   # in-kernel values
    vmem_limit = int(min(112 * 2 ** 20, max(32 * 2 ** 20, 2 * vmem_need)))
    # TODO(synk): very large C*H*W (image slab beyond the VMEM budget) would need
    #             an additional channel-tiling reduction axis.

    out = pl.pallas_call(
        kernel,
        out_shape=jax.ShapeDtypeStruct((B, N, Ho_pad * Wp), x.dtype),
        grid=(B, n_tiles),
        in_specs=[
            pl.BlockSpec((None, C, L), lambda b, r: (b, 0, 0)),   # image (resident per b)
            pl.BlockSpec((KK, N, C), lambda b, r: (0, 0, 0)),     # taps (resident)
            pl.BlockSpec((N, 1), lambda b, r: (0, 0)),            # bias (resident)
        ],
        out_specs=pl.BlockSpec((None, N, TILE), lambda b, r: (b, 0, r)),
        compiler_params=pltpu.CompilerParams(
            dimension_semantics=("parallel", "parallel"),
            vmem_limit_bytes=vmem_limit),
    )(x_flat, w_taps, b_col)

    # Drop padded tail rows and the (kw-1)*dilation junk columns per row.
    return out.reshape(B, N, Ho_pad, Wp)[:, :, :Ho, :Wo]


# ----------------------------------------------------------------------------
# HF_Conv fixed filter bank (mirrors the PyTorch __init__)
# ----------------------------------------------------------------------------
def make_hf_kernel_weight(out_channels, in_channels_per_group, kernel_size=3):
    w = np.zeros((out_channels, in_channels_per_group, kernel_size, kernel_size),
                 dtype=np.float32)
    for idx in range(out_channels):
        if idx == 0:
            w[idx, :, 0, :] = -1; w[idx, :, 0, 1] = -2
            w[idx, :, -1, :] = 1; w[idx, :, -1, 1] = 2
        elif idx == 1:
            w[idx, :, :, 0] = -1; w[idx, :, 1, 0] = -2
            w[idx, :, :, -1] = 1; w[idx, :, 1, -1] = 2
        elif idx == 2:
            w[idx, :, 0, 0] = -2; w[idx, :, 0, 1] = -1; w[idx, :, 1, 0] = -1
            w[idx, :, 1, -1] = 1; w[idx, :, -1, 1] = 1; w[idx, :, -1, -1] = 2
        elif idx == 3:
            w[idx, :, 0, 1] = 1; w[idx, :, 0, -1] = 2; w[idx, :, 1, 0] = -1
            w[idx, :, 1, -1] = 1; w[idx, :, -1, 0] = -2; w[idx, :, -1, 1] = -1
        elif idx == 4:
            w[idx, :, :, :] = -1 / 16; w[idx, :, 1, :] = -2 / 16
            w[idx, :, :, 1] = -2 / 16; w[idx, :, 1, 1] = 12 / 16
        elif idx == 5:
            w[idx, :, 1, :] = -1; w[idx, :, :, 1] = -1; w[idx, :, 1, 1] = 4
        elif idx == 6:
            w[idx, :, :, :] = -1; w[idx, :, 1, 1] += 9
        elif idx == 7:
            w[idx, :, :, :] = 1; w[idx, :, 1, :] = -2
            w[idx, :, :, 1] = -2; w[idx, :, 1, 1] = 4
        elif idx == 8:
            w[idx, :, :, :] = 1; w[idx, :, 0, :] = -1; w[idx, :, 1, 1] = -2
        elif idx == 9:
            w[idx, :, :, :] = 1; w[idx, :, 0:2, 1:3] = -1; w[idx, :, 1, 1] = -2
        elif idx == 10:
            w[idx, :, :, :] = 1; w[idx, :, :, 2] = -1; w[idx, :, 1, 1] = -2
        elif idx == 11:
            w[idx, :, :, :] = 1; w[idx, :, 1:3, 1:3] = -1; w[idx, :, 1, 1] = -2
        elif idx == 12:
            w[idx, :, :, :] = 1; w[idx, :, 1, 1] = -2; w[idx, :, 2, :] = -1
        elif idx == 13:
            w[idx, :, :, :] = 1; w[idx, :, 1:3, 0:2] = -1; w[idx, :, 1, 1] = -2
        elif idx == 14:
            w[idx, :, :, :] = 1; w[idx, :, :, 0] = -1; w[idx, :, 1, 1] = -2
        elif idx == 15:
            w[idx, :, :, :] = 1; w[idx, :, :2, :2] = -1; w[idx, :, 1, 1] = -2
        elif idx == 16:
            w[idx, :, :, :] = -1; w[idx, :, 1, :] = 2
        elif idx == 17:
            w[idx, :, :, :] = -1; w[idx, :, :, 1] = 2
        elif idx == 18:
            w[idx, :, :, :] = -1
            w[idx, :, 0, 2] = 2; w[idx, :, 1, 1] = 2; w[idx, :, 2, 0] = 2
        elif idx == 19:
            w[idx, :, :, :] = -1
            w[idx, :, 0, 0] = 2; w[idx, :, 1, 1] = 2; w[idx, :, 2, 2] = 2
    return jnp.asarray(w)


# ----------------------------------------------------------------------------
# Pure-JAX reference (same semantics as the PyTorch forward), f32-exact
# ----------------------------------------------------------------------------
def _reference(x, kernel_weight, kernel_factor, bias, stride, padding, dilation, groups):
    w = kernel_weight * kernel_factor
    y = jax.lax.conv_general_dilated(
        x, w,
        window_strides=(stride, stride),
        padding=((padding, padding), (padding, padding)),
        rhs_dilation=(dilation, dilation),
        dimension_numbers=("NCHW", "OIHW", "NCHW"),
        feature_group_count=groups,
        precision=jax.lax.Precision.HIGHEST,
    )
    if bias is not None:
        y = y + bias[None, :, None, None]
    return y


if __name__ == "__main__":
    B, C, H, W = 2, 4, 16, 16
    out_channels = 20              # exercises all 20 fixed HF filters
    kernel_size, stride, padding, dilation, groups = 3, 1, 0, 1, 1

    key = jax.random.PRNGKey(0)
    k1, k2, k3 = jax.random.split(key, 3)
    x = jax.random.normal(k1, (B, C, H, W), jnp.float32)
    kernel_weight = make_hf_kernel_weight(out_channels, C // groups, kernel_size)
    kernel_factor = 1.0 + 0.1 * jax.random.normal(k2, (out_channels, 1, 1, 1), jnp.float32)
    bias = 0.1 * jax.random.normal(k3, (out_channels,), jnp.float32)

    out = jax.block_until_ready(
        hf_conv(x, kernel_weight, kernel_factor, bias,
                stride=stride, padding=padding, dilation=dilation, groups=groups))
    ref = _reference(x, kernel_weight, kernel_factor, bias,
                     stride, padding, dilation, groups)

    Ho = (H + 2 * padding - dilation * (kernel_size - 1) - 1) // stride + 1
    Wo = (W + 2 * padding - dilation * (kernel_size - 1) - 1) // stride + 1
    assert out.shape == (B, out_channels, Ho, Wo), out.shape

    # Tolerances accommodate MXU bf16-pass lowering of the f32 matmul at DEFAULT
    # precision (HIGHEST was dropped per the perf review); any indexing/tiling bug
    # would produce O(1)+ relative error and still fail these checks.
    rel_fro = float(jnp.linalg.norm(out - ref) / jnp.linalg.norm(ref))
    max_err = float(jnp.max(jnp.abs(out - ref)))
    max_ref = float(jnp.max(jnp.abs(ref)))
    assert rel_fro < 1e-2, f"relative Frobenius error too large: {rel_fro}"
    assert max_err < 5e-2 * max_ref + 1e-3, f"max abs error too large: {max_err}"
    print("KERNEL_OK")
</pallas_src>

<mosaic_0001>
module attributes {stable_mosaic.version = 11 : i64} {
  func.func @kernel(%arg0: i32, %arg1: i32, %arg2: memref<1x4x304xf32, #tpu.memory_space<vmem>>, %arg3: memref<9x20x4xf32, #tpu.memory_space<vmem>>, %arg4: memref<20x1xf32, #tpu.memory_space<vmem>>, %arg5: memref<1x20x128xf32, #tpu.memory_space<vmem>>) attributes {dimension_semantics = [#tpu.dimension_semantics<parallel>, #tpu.dimension_semantics<parallel>], iteration_bounds = array<i64: 2, 2>, scalar_prefetch = 0 : i64, scratch_operands = 0 : i64, tpu.core_type = #tpu.core_type<tc>, window_params = [{transform_indices = @transform_0, window_bounds = array<i64: 1, 4, 304>}, {pipeline_mode = #tpu.pipeline_mode<synchronous>, transform_indices = @transform_1, window_bounds = array<i64: 9, 20, 4>}, {pipeline_mode = #tpu.pipeline_mode<synchronous>, transform_indices = @transform_2, window_bounds = array<i64: 20, 1>}, {transform_indices = @transform_3, window_bounds = array<i64: 1, 20, 128>}]} {
    %c128_i32 = arith.constant 128 : i32
    %0 = arith.muli %arg1, %c128_i32 : i32
    %1 = tpu.assume_multiple %0, 128 : i32
    %c0 = arith.constant 0 : index
    %c0_0 = arith.constant 0 : index
    %2 = arith.index_cast %1 : i32 to index
    %3 = vector.load %arg2[%c0, %c0_0, %2] : memref<1x4x304xf32, #tpu.memory_space<vmem>>, vector<1x4x162xf32>
    %4 = vector.shape_cast %3 : vector<1x4x162xf32> to vector<4x162xf32>
    %cst = arith.constant 0.000000e+00 : f32
    %5 = vector.broadcast %cst : f32 to vector<20x128xf32>
    %6 = vector.extract_strided_slice %4 {offsets = [0, 0], sizes = [4, 128], strides = [1, 1]} : vector<4x162xf32> to vector<4x128xf32>
    %c0_1 = arith.constant 0 : index
    %c0_2 = arith.constant 0 : index
    %c0_3 = arith.constant 0 : index
    %7 = vector.load %arg3[%c0_1, %c0_2, %c0_3] : memref<9x20x4xf32, #tpu.memory_space<vmem>>, vector<1x20x4xf32>
    %8 = vector.shape_cast %7 : vector<1x20x4xf32> to vector<20x4xf32>
    %cst_4 = arith.constant dense<0.000000e+00> : vector<20x128xf32>
    %9 = tpu.matmul %8, %6, %cst_4 {dimension_numbers = #tpu.dot_dimension_numbers<[1], [0], [0], [1], [0, 0, 1, 1], [], []>} : vector<20x4xf32>, vector<4x128xf32>, vector<20x128xf32> -> vector<20x128xf32>
    %10 = arith.addf %5, %9 : vector<20x128xf32>
    %11 = vector.extract_strided_slice %4 {offsets = [0, 1], sizes = [4, 128], strides = [1, 1]} : vector<4x162xf32> to vector<4x128xf32>
    %c1 = arith.constant 1 : index
    %c0_5 = arith.constant 0 : index
    %c0_6 = arith.constant 0 : index
    %12 = vector.load %arg3[%c1, %c0_5, %c0_6] : memref<9x20x4xf32, #tpu.memory_space<vmem>>, vector<1x20x4xf32>
    %13 = vector.shape_cast %12 : vector<1x20x4xf32> to vector<20x4xf32>
    %cst_7 = arith.constant dense<0.000000e+00> : vector<20x128xf32>
    %14 = tpu.matmul %13, %11, %cst_7 {dimension_numbers = #tpu.dot_dimension_numbers<[1], [0], [0], [1], [0, 0, 1, 1], [], []>} : vector<20x4xf32>, vector<4x128xf32>, vector<20x128xf32> -> vector<20x128xf32>
    %15 = arith.addf %10, %14 : vector<20x128xf32>
    %16 = vector.extract_strided_slice %4 {offsets = [0, 2], sizes = [4, 128], strides = [1, 1]} : vector<4x162xf32> to vector<4x128xf32>
    %c2 = arith.constant 2 : index
    %c0_8 = arith.constant 0 : index
    %c0_9 = arith.constant 0 : index
    %17 = vector.load %arg3[%c2, %c0_8, %c0_9] : memref<9x20x4xf32, #tpu.memory_space<vmem>>, vector<1x20x4xf32>
    %18 = vector.shape_cast %17 : vector<1x20x4xf32> to vector<20x4xf32>
    %cst_10 = arith.constant dense<0.000000e+00> : vector<20x128xf32>
    %19 = tpu.matmul %18, %16, %cst_10 {dimension_numbers = #tpu.dot_dimension_numbers<[1], [0], [0], [1], [0, 0, 1, 1], [], []>} : vector<20x4xf32>, vector<4x128xf32>, vector<20x128xf32> -> vector<20x128xf32>
    %20 = arith.addf %15, %19 : vector<20x128xf32>
    %21 = vector.extract_strided_slice %4 {offsets = [0, 16], sizes = [4, 128], strides = [1, 1]} : vector<4x162xf32> to vector<4x128xf32>
    %c3 = arith.constant 3 : index
    %c0_11 = arith.constant 0 : index
    %c0_12 = arith.constant 0 : index
    %22 = vector.load %arg3[%c3, %c0_11, %c0_12] : memref<9x20x4xf32, #tpu.memory_space<vmem>>, vector<1x20x4xf32>
    %23 = vector.shape_cast %22 : vector<1x20x4xf32> to vector<20x4xf32>
    %cst_13 = arith.constant dense<0.000000e+00> : vector<20x128xf32>
    %24 = tpu.matmul %23, %21, %cst_13 {dimension_numbers = #tpu.dot_dimension_numbers<[1], [0], [0], [1], [0, 0, 1, 1], [], []>} : vector<20x4xf32>, vector<4x128xf32>, vector<20x128xf32> -> vector<20x128xf32>
    %25 = arith.addf %20, %24 : vector<20x128xf32>
    %26 = vector.extract_strided_slice %4 {offsets = [0, 17], sizes = [4, 128], strides = [1, 1]} : vector<4x162xf32> to vector<4x128xf32>
    %c4 = arith.constant 4 : index
    %c0_14 = arith.constant 0 : index
    %c0_15 = arith.constant 0 : index
    %27 = vector.load %arg3[%c4, %c0_14, %c0_15] : memref<9x20x4xf32, #tpu.memory_space<vmem>>, vector<1x20x4xf32>
    %28 = vector.shape_cast %27 : vector<1x20x4xf32> to vector<20x4xf32>
    %cst_16 = arith.constant dense<0.000000e+00> : vector<20x128xf32>
    %29 = tpu.matmul %28, %26, %cst_16 {dimension_numbers = #tpu.dot_dimension_numbers<[1], [0], [0], [1], [0, 0, 1, 1], [], []>} : vector<20x4xf32>, vector<4x128xf32>, vector<20x128xf32> -> vector<20x128xf32>
    %30 = arith.addf %25, %29 : vector<20x128xf32>
    %31 = vector.extract_strided_slice %4 {offsets = [0, 18], sizes = [4, 128], strides = [1, 1]} : vector<4x162xf32> to vector<4x128xf32>
    %c5 = arith.constant 5 : index
    %c0_17 = arith.constant 0 : index
    %c0_18 = arith.constant 0 : index
    %32 = vector.load %arg3[%c5, %c0_17, %c0_18] : memref<9x20x4xf32, #tpu.memory_space<vmem>>, vector<1x20x4xf32>
    %33 = vector.shape_cast %32 : vector<1x20x4xf32> to vector<20x4xf32>
    %cst_19 = arith.constant dense<0.000000e+00> : vector<20x128xf32>
    %34 = tpu.matmul %33, %31, %cst_19 {dimension_numbers = #tpu.dot_dimension_numbers<[1], [0], [0], [1], [0, 0, 1, 1], [], []>} : vector<20x4xf32>, vector<4x128xf32>, vector<20x128xf32> -> vector<20x128xf32>
    %35 = arith.addf %30, %34 : vector<20x128xf32>
    %36 = vector.extract_strided_slice %4 {offsets = [0, 32], sizes = [4, 128], strides = [1, 1]} : vector<4x162xf32> to vector<4x128xf32>
    %c6 = arith.constant 6 : index
    %c0_20 = arith.constant 0 : index
    %c0_21 = arith.constant 0 : index
    %37 = vector.load %arg3[%c6, %c0_20, %c0_21] : memref<9x20x4xf32, #tpu.memory_space<vmem>>, vector<1x20x4xf32>
    %38 = vector.shape_cast %37 : vector<1x20x4xf32> to vector<20x4xf32>
    %cst_22 = arith.constant dense<0.000000e+00> : vector<20x128xf32>
    %39 = tpu.matmul %38, %36, %cst_22 {dimension_numbers = #tpu.dot_dimension_numbers<[1], [0], [0], [1], [0, 0, 1, 1], [], []>} : vector<20x4xf32>, vector<4x128xf32>, vector<20x128xf32> -> vector<20x128xf32>
    %40 = arith.addf %35, %39 : vector<20x128xf32>
    %41 = vector.extract_strided_slice %4 {offsets = [0, 33], sizes = [4, 128], strides = [1, 1]} : vector<4x162xf32> to vector<4x128xf32>
    %c7 = arith.constant 7 : index
    %c0_23 = arith.constant 0 : index
    %c0_24 = arith.constant 0 : index
    %42 = vector.load %arg3[%c7, %c0_23, %c0_24] : memref<9x20x4xf32, #tpu.memory_space<vmem>>, vector<1x20x4xf32>
    %43 = vector.shape_cast %42 : vector<1x20x4xf32> to vector<20x4xf32>
    %cst_25 = arith.constant dense<0.000000e+00> : vector<20x128xf32>
    %44 = tpu.matmul %43, %41, %cst_25 {dimension_numbers = #tpu.dot_dimension_numbers<[1], [0], [0], [1], [0, 0, 1, 1], [], []>} : vector<20x4xf32>, vector<4x128xf32>, vector<20x128xf32> -> vector<20x128xf32>
    %45 = arith.addf %40, %44 : vector<20x128xf32>
    %46 = vector.extract_strided_slice %4 {offsets = [0, 34], sizes = [4, 128], strides = [1, 1]} : vector<4x162xf32> to vector<4x128xf32>
    %c8 = arith.constant 8 : index
    %c0_26 = arith.constant 0 : index
    %c0_27 = arith.constant 0 : index
    %47 = vector.load %arg3[%c8, %c0_26, %c0_27] : memref<9x20x4xf32, #tpu.memory_space<vmem>>, vector<1x20x4xf32>
    %48 = vector.shape_cast %47 : vector<1x20x4xf32> to vector<20x4xf32>
    %cst_28 = arith.constant dense<0.000000e+00> : vector<20x128xf32>
    %49 = tpu.matmul %48, %46, %cst_28 {dimension_numbers = #tpu.dot_dimension_numbers<[1], [0], [0], [1], [0, 0, 1, 1], [], []>} : vector<20x4xf32>, vector<4x128xf32>, vector<20x128xf32> -> vector<20x128xf32>
    %50 = arith.addf %45, %49 : vector<20x128xf32>
    %c0_29 = arith.constant 0 : index
    %c0_30 = arith.constant 0 : index
    %51 = vector.load %arg4[%c0_29, %c0_30] : memref<20x1xf32, #tpu.memory_space<vmem>>, vector<20x1xf32>
    %52 = vector.broadcast %51 : vector<20x1xf32> to vector<20x128xf32>
    %53 = arith.addf %50, %52 : vector<20x128xf32>
    %c0_31 = arith.constant 0 : index
    %c0_32 = arith.constant 0 : index
    %c0_33 = arith.constant 0 : index
    %54 = vector.load %arg5[%c0_31, %c0_32, %c0_33] : memref<1x20x128xf32, #tpu.memory_space<vmem>>, vector<1x20x128xf32>
    %55 = vector.shape_cast %54 : vector<1x20x128xf32> to vector<20x128xf32>
    %56 = vector.shape_cast %53 : vector<20x128xf32> to vector<1x20x128xf32>
    tpu.vector_store %arg5[%c0_31, %c0_32, %c0_33], %56 {strides = array<i32>} : memref<1x20x128xf32, #tpu.memory_space<vmem>>, vector<1x20x128xf32>,
    return
  }
  func.func @transform_0(%arg0: i32, %arg1: i32) -> (i32, i32, i32) {
    %c0_i32 = arith.constant 0 : i32
    %c0_i32_0 = arith.constant 0 : i32
    %c0_i32_1 = arith.constant 0 : i32
    return %arg0, %c0_i32, %c0_i32_0 : i32, i32, i32
  }
  func.func @transform_1(%arg0: i32, %arg1: i32) -> (i32, i32, i32) {
    %c0_i32 = arith.constant 0 : i32
    %c0_i32_0 = arith.constant 0 : i32
    %c0_i32_1 = arith.constant 0 : i32
    %c0_i32_2 = arith.constant 0 : i32
    return %c0_i32, %c0_i32_0, %c0_i32_1 : i32, i32, i32
  }
  func.func @transform_2(%arg0: i32, %arg1: i32) -> (i32, i32) {
    %c0_i32 = arith.constant 0 : i32
    %c0_i32_0 = arith.constant 0 : i32
    %c0_i32_1 = arith.constant 0 : i32
    return %c0_i32, %c0_i32_0 : i32, i32
  }
  func.func @transform_3(%arg0: i32, %arg1: i32) -> (i32, i32, i32) {
    %c0_i32 = arith.constant 0 : i32
    %c0_i32_0 = arith.constant 0 : i32
    return %arg0, %c0_i32, %arg1 : i32, i32, i32
  }
}

</mosaic_0001>

<bundles_post_ra>
// kernel: tpu_custom_call.1
= control target key start
LH: loop header
LB: loop body
LE: loop exit
PB: predicated region body
PF: predicated region fallthrough
CT: control target
= control target key end

     0   :  { %s1621_s12 = smov 0   ;;  %s1623_s13 = smov 0   ;;  %s1906_s0 = inlined_call_operand.vmem [shape: f32[2,4,304], index: 0, kind: input, shape index: {}]   ;;  %s1907_s1 = inlined_call_operand.vmem [shape: f32[9,20,4], index: 1, kind: input, shape index: {}]   ;;  %s1908_s2 = inlined_call_operand.vmem [shape: f32[20,1], index: 2, kind: input, shape index: {}]   ;;  %s1909_s3 = inlined_call_operand.vmem [shape: f32[2,20,256], index: 3, kind: output, shape index: {}]  }
   0x1   :  { %s1625_s14 = smov 0   ;;  %s1627_s15 = smov 0  }
   0x2   :  { %s1629_s16 = smov 0   ;;  %s1631_s17 = smov 0  }
   0x3   :  { %s1633_s18 = smov 0  }
   0x4 LB: > { %s22_s19 = sadd.s32 1, %s1580_s16  ;;  %s25_s20 = sadd.s32 1, %s1584_s17  ;;  %s1588_s18 = sphi %s1633_s18, %s13_s18   ;;  %s1584_s17 = sphi %s1631_s17, %s1916_s17   ;;  %s1580_s16 = sphi %s1629_s16, %s1915_s16   ;;  %s1576_s15 = sphi %s1627_s15, %s1914_s15   ;;  %s1572_s14 = sphi %s1625_s14, %s1913_s14   ;;  %s1568_s13 = sphi %s1623_s13, %s1912_s13   ;;  %s1564_s12 = sphi %s1621_s12, %s1911_s12  }
   0x5   : > { %p23_p0 = scmp.ge.s32.totalorder %s22_s19, 2  ;;  %s1253_s21 = sadd.s32 4294967295, %s1588_s18  }
   0x6   : > { %p112_p1 = scmp.ne.s32.totalorder %s1568_s13, %s1564_s12  ;;  %p113_p2 = scmp.eq.s32.totalorder %s1253_s21, 3 }
   0x7   : > { %s1918_s19 = smov (%p23_p0, %s22_s19), 0  ;;  %s1920_s20 = smov (!%p23_p0, %s25_s20), %s1584_s17 }
   0x8   : > { %s98_s22 = ssub.s32 %s1580_s16, %s1918_s19  ;;  %p27_p3 = scmp.ge.s32.totalorder %s1920_s20, 2 }
   0x9   : > { %p1257_p4 = scmp.ge.s32.totalorder %s1588_s18, 1  ;;  %p1667_p5 = por %p113_p2, %p112_p1 }
   0xa   : > { %p151_p6 = scmp.lt.s32.totalorder %s1588_s18, 5  ;;  %s1922_s20 = smov (%p27_p3, %s1920_s20), 0 }
   0xb   : > { %s97_s24 = ssub.s32 %s1584_s17, %s1922_s20  ;;  %s102_s26 = sadd.s32 1, %s1568_s13 }
   0xc   : > { %p152_p7 = pnand %p1257_p4, %p151_p6  ;;  %s99_s25 = sor.u32 %s98_s22, %s97_s24 }
   0xd   : > { %p100_p8 = scmp.eq.s32.totalorder %s99_s25, 0  ;;  %p174_p9 = scmp.lt.s32.totalorder (!%p152_p7), %s1576_s15, 1  ;;  %v1590_v0 = vmov (!%p152_p7), 0.0   ;;  %vm1591_vm0 = vmmov (!%p152_p7), 0   ;;  %v1112_v3 = vld [vmem:[%s1908_s2] sm:$0xff] (!%p152_p7)  ;;  %v1113_v4 = vld [vmem:[%s1908_s2 + $0x8] sm:$0xff] (!%p152_p7) }
   0xe   : > { %155 = sbr.rel (%p152_p7) target bundleno = 428 (0x1ac), region = 32  ;;  %s1259_s28 = sshll.u32 (!%p152_p7), %s1572_s14, 7  ;;  %1360 = vmatprep.subr.mxu0 (!%p152_p7), %v1590_v0  ;;  %1459 = vmatprep.subr.mxu1 (!%p152_p7), %v1590_v0  ;;  %v1600_v5 = vmov (!%p152_p7), 0   ;;  %v1114_v6 = vld [vmem:[%s1908_s2 + $0x10] sm:$0xf] (!%p152_p7)  ;;  %vm198_vm1 = vcmask (!%p152_p7), 1039360  }
   0xf   : > { %s1678_s27 = scalar_select %p100_p8, %s1568_s13, %s102_s26  }
  0x10   : > { %s180_s29 = sshra.s32 (!%p152_p7), %s1259_s28, 7  ;;  %1365 = vmatprep.mubr.msk.f32.mxu1 (!%p152_p7), %vm1591_vm0, %v1590_v0  ;;  %1362 = vmatprep.mubr.msk.f32.mxu0 (!%p152_p7), %vm1591_vm0, %v1590_v0  ;;  %s1592_s10 = smov (!%p152_p7), 126   ;;  %vm392_vm2 = vcmask (!%p152_p7), 1031168   ;;  %vm210_vm3 = vcmask (!%p152_p7), 1043456   ;;  %v1262_v11 = vld [vmem:[%s1907_s1 + $0x20] sm:$0xff] (!%p152_p7)  ;;  %vm200_vm4 = vcmask (!%p152_p7), 31744  }
  0x11   : > { %s1260_s5 = sshll.u32 (!%p152_p7), %s180_s29, 2  ;;  %s1593_s11 = smov (!%p152_p7), 127   ;;  %1531 = vset.pattern.permute.xlu0 (!%p152_p7), %v1600_v5  ;;  %1532 = vset.pattern.permute.xlu1 (!%p152_p7), %v1600_v5  ;;  %v1261_v13 = vld [vmem:[%s1907_s1 + $0x18] sm:$0xff] (!%p152_p7)  ;;  %v1263_v15 = vld [vmem:[%s1907_s1 + $0x28] sm:$0xf] (!%p152_p7)  ;;  %v1272_v18 = vld [vmem:[%s1907_s1 + $0x30] sm:$0xff] (!%p152_p7) }
  0x12   : > { %s1594_s21 = smov (!%p152_p7), 112   ;;  %s1595_s22 = smov (!%p152_p7), 111   ;;  %vm496_vm5 = vcmask (!%p152_p7), 916480   ;;  %vm600_vm6 = vcmask (!%p152_p7), 908288   ;;  %v185_v19 = vld [vmem:[%s1907_s1] sm:$0xff] (!%p152_p7)  ;;  %v1273_v24 = vld [vmem:[%s1907_s1 + $0x38] sm:$0xff] (!%p152_p7) }
  0x13   : > { %s1596_s24 = smov (!%p152_p7), 110   ;;  %s1597_s25 = smov (!%p152_p7), 96   ;;  %v186_v25 = vld [vmem:[%s1907_s1 + $0x8] sm:$0xff] (!%p152_p7)  ;;  %v1274_v28 = vld [vmem:[%s1907_s1 + $0x40] sm:$0xf] (!%p152_p7)  ;;  %vm808_vm7 = vcmask (!%p152_p7), 785408  }
  0x14   : > { %s1598_s26 = smov (!%p152_p7), 95   ;;  %s1599_s28 = smov (!%p152_p7), 94   ;;  %v187_v29 = vld [vmem:[%s1907_s1 + $0x10] sm:$0xf] (!%p152_p7)  ;;  %vm704_vm8 = vcmask (!%p152_p7), 900096   ;;  %v1286_v32 = vld [vmem:[%s1907_s1 + $0x60] sm:$0xff] (!%p152_p7) }
  0x15   : > { %s175_s30 = scalar_select %p174_p9, %s1576_s15, 1  ;;  %v1279_v34 = vld [vmem:[%s1907_s1 + $0x48] sm:$0xff]  ;;  %v1280_v39 = vld [vmem:[%s1907_s1 + $0x50] sm:$0xff]  ;;  %v1281_v41 = vld [vmem:[%s1907_s1 + $0x58] sm:$0xf]  ;;  %vm1016_vm9 = vcmask 769024  }
  0x16   : > { %v1287_v36 = vld [vmem:[%s1907_s1 + $0x68] sm:$0xff]  ;;  %v1288_v40 = vld [vmem:[%s1907_s1 + $0x70] sm:$0xf]  ;;  %vm912_vm10 = vcmask 777216   ;;  %v1293_v46 = vld [vmem:[%s1907_s1 + $0x78] sm:$0xff] }
  0x17   : > { %s1462_s4 = smul.u32 12, %s175_s30  ;;  %v1300_v44 = vld [vmem:[%s1907_s1 + $0x90] sm:$0xff]  ;;  %v1301_v48 = vld [vmem:[%s1907_s1 + $0x98] sm:$0xff]  ;;  %v1294_v49 = vld [vmem:[%s1907_s1 + $0x80] sm:$0xff] }
  0x18   : > { %v1302_v50 = vld [vmem:[%s1907_s1 + $0xa0] sm:$0xf]  ;;  %v1295_v51 = vld [vmem:[%s1907_s1 + $0x88] sm:$0xf]  ;;  %v1308_v55 = vld [vmem:[%s1907_s1 + $0xb0] sm:$0xff] }
  0x19   : > { %s178_s8 = scalar_lea.vmem %s1906_s0, %s1462_s4  ;;  %v1314_v52 = vld [vmem:[%s1907_s1 + $0xc0] sm:$0xff]  ;;  %v1307_v53 = vld [vmem:[%s1907_s1 + $0xa8] sm:$0xff]  ;;  %v1316_v56 = vld [vmem:[%s1907_s1 + $0xd0] sm:$0xf] }
  0x1a   : > { %s183_s9 = scalar_lea.vmem %s178_s8, %s1260_s5  ;;  %v1315_v54 = vld [vmem:[%s1907_s1 + $0xc8] sm:$0xff]  ;;  %v1309_v57 = vld [vmem:[%s1907_s1 + $0xb8] sm:$0xf] }
  0x1b   : > { %v184_v1 = vld [vmem:[%s183_s9] sm:$0xff] }
  0x1c   : > { %388 = vrot.lane.b32.xlu1 %v184_v1, %s1592_s10  ;;  %194 = vrot.lane.b32.xlu0 %v184_v1, %s1593_s11  ;;  %v193_v2 = vcombine.high %v184_v1, %v184_v1 }
  0x20   : > { %390 = vrot.lane.b32.xlu1 %v193_v2, %s1592_s10  ;;  %196 = vrot.lane.b32.xlu0 %v193_v2, %s1593_s11 }
  0x24   : > { %494 = vrot.lane.b32.xlu1 %v193_v2, %s1594_s21  ;;  %492 = vrot.lane.b32.xlu0 %v184_v1, %s1594_s21 }
  0x28   : > { %598 = vrot.lane.b32.xlu1 %v193_v2, %s1595_s22  ;;  %596 = vrot.lane.b32.xlu0 %v184_v1, %s1595_s22 }
  0x2c   : > { %702 = vrot.lane.b32.xlu1 %v193_v2, %s1596_s24  ;;  %700 = vrot.lane.b32.xlu0 %v184_v1, %s1596_s24  ;;  %s171_s24 = sand.u32 1, %s1564_s12   ;;  %s1463_s12 = smul.u32 (%p1667_p5), 6, %s1576_s15 }
  0x30   : > { %806 = vrot.lane.b32.xlu1 %v193_v2, %s1597_s25  ;;  %804 = vrot.lane.b32.xlu0 %v184_v1, %s1597_s25  ;;  %s1461_s25 = smul.u32 24, %s171_s24 }
  0x34   : > { %910 = vrot.lane.b32.xlu1 %v193_v2, %s1598_s26  ;;  %908 = vrot.lane.b32.xlu0 %v184_v1, %s1598_s26  ;;  %s173_s26 = scalar_lea.vmem [#allocation2], %s1461_s25 }
  0x38   : > { %1014 = vrot.lane.b32.xlu1 %v193_v2, %s1599_s28  ;;  %1012 = vrot.lane.b32.xlu0 %v184_v1, %s1599_s28  ;;  %s1144_s28 = sadd.s32 (%p1667_p5), %s1572_s14, %s1463_s12 }
  0x39   : > { %s1321_s29 = sshll.u32 (%p1667_p5), %s1144_s28, 3 }
  0x3a   : > { %s1146_s5 = scalar_lea.vmem (%p1667_p5), %s1909_s3, %s1321_s29 }
  0x3c   : > { %1117 = vperm.xlu0 %1531, %v1112_v3   ;;  %1122 = vperm.xlu1 %1532, %v1113_v4  }
  0x40   : > { %1127 = vperm.xlu1 %1532, %v1114_v6  }
  0x8e   : > { %v389_v7 = vpop.permute.xlu1 %388  ;;  %v195_v8 = vpop.permute.xlu0 %194 }
  0x92   : > { %v391_v9 = vpop.permute.xlu1 %390  ;;  %v197_v10 = vpop.permute.xlu0 %196 }
  0x93   : > { %v199_v12 = vsel %vm198_vm1, %v195_v8, %v197_v10  ;;  %v393_v14 = vsel %vm392_vm2, %v389_v7, %v391_v9 }
  0x94   : > { %1361 = vmatpush3.msk.msra.mxu0 %vm210_vm3, %v199_v12  ;;  %1460 = vmatpush3.msk.msra.mxu1 %vm210_vm3, %v199_v12 }
  0x95   : > { %1366 = vmatmul.mubr.msk.f32.vlgmr.msra.gmra.mrb[0].mxu1 %vm200_vm4, %v1262_v11  ;;  %1371 = vmatprep.subr.mxu1 %v1590_v0 }
  0x96   : > { %1382 = vmatprep.subr.mxu0 %v1590_v0  ;;  %1363 = vmatmul.mubr.msk.f32.vlgmr.msra.gmra.mrb[0].mxu0 %vm200_vm4, %v1261_v13  ;;  %v495_v16 = vpop.permute.xlu1 %494  ;;  %v493_v17 = vpop.permute.xlu0 %492 }
  0x97   : > { %1372 = vmatpush3.msk.msra.mxu1 %vm210_vm3, %v184_v1  ;;  %1383 = vmatpush3.msk.msra.mxu0 %vm210_vm3, %v393_v14  ;;  %v497_v22 = vsel %vm496_vm5, %v493_v17, %v495_v16 }
  0x98   : > { %1368 = vmatprep.mubr.msk.f32.mxu1 %vm1591_vm0, %v1590_v0  ;;  %1393 = vmatprep.subr.mxu1 %v1590_v0 }
  0x99   : > { %1369 = vmatmul.mubr.msk.f32.gmra.mrb[2].mxu1 %vm200_vm4, %v1263_v15  ;;  %1384 = vmatprep.mubr.msk.f32.mxu0 %vm1591_vm0, %v1590_v0 }
  0x9a   : > { %1373 = vmatprep.mubr.msk.f32.mxu1 %vm1591_vm0, %v1590_v0  ;;  %v599_v20 = vpop.permute.xlu1 %598  ;;  %v597_v21 = vpop.permute.xlu0 %596  ;;  %1385 = vmatmul.mubr.msk.f32.vlgmr.msra.gmra.mrb[2].mxu0 %vm200_vm4, %v1272_v18 }
  0x9b   : > { %v601_v23 = vsel %vm600_vm6, %v597_v21, %v599_v20  ;;  %1404 = vmatprep.subr.mxu0 %v1590_v0  ;;  %1387 = vmatprep.mubr.msk.f32.mxu0 %vm1591_vm0, %v1590_v0 }
  0x9c   : > { %1405 = vmatpush3.msk.msra.mxu0 %vm210_vm3, %v601_v23 }
  0x9d   : > { %1374 = vmatmul.mubr.msk.f32.vlgmr.msra.gmra.mrb[4].mxu1 %vm200_vm4, %v185_v19  ;;  %1426 = vmatprep.subr.mxu0 %v1590_v0 }
  0x9e   : > { %1394 = vmatpush3.msk.msra.mxu1 %vm210_vm3, %v497_v22  ;;  %1376 = vmatprep.mubr.msk.f32.mxu1 %vm1591_vm0, %v1590_v0  ;;  %v703_v26 = vpop.permute.xlu1 %702  ;;  %v701_v27 = vpop.permute.xlu0 %700 }
  0x9f   : > { %1388 = vmatmul.mubr.msk.f32.gmra.mrb[4].mxu0 %vm200_vm4, %v1273_v24  ;;  %1415 = vmatprep.subr.mxu1 %v1590_v0  ;;  %v705_v35 = vsel %vm704_vm8, %v701_v27, %v703_v26 }
  0xa0   : > { %1390 = vmatprep.mubr.msk.f32.mxu0 %vm1591_vm0, %v1590_v0 }
  0xa1   : > { %1377 = vmatmul.mubr.msk.f32.gmra.mrb[6].mxu1 %vm200_vm4, %v186_v25 }
  0xa2   : > { %1379 = vmatprep.mubr.msk.f32.mxu1 %vm1591_vm0, %v1590_v0  ;;  %v807_v30 = vpop.permute.xlu1 %806  ;;  %v805_v31 = vpop.permute.xlu0 %804 }
  0xa3   : > { %1391 = vmatmul.mubr.msk.f32.gmra.mrb[6].mxu0 %vm200_vm4, %v1274_v28  ;;  %v809_v33 = vsel %vm808_vm7, %v805_v31, %v807_v30 }
  0xa4   : > { %1406 = vmatprep.mubr.msk.f32.mxu0 %vm1591_vm0, %v1590_v0 }
  0xa5   : > { %1380 = vmatmul.mubr.msk.f32.gmra.mrb[8].mxu1 %vm200_vm4, %v187_v29 }
  0xa6   : > { %1395 = vmatprep.mubr.msk.f32.mxu1 %vm1591_vm0, %v1590_v0  ;;  %v911_v37 = vpop.permute.xlu1 %910  ;;  %v909_v38 = vpop.permute.xlu0 %908 }
  0xa7   : > { %1407 = vmatmul.mubr.msk.f32.vlgmr.msra.gmra.mrb[8].mxu0 %vm200_vm4, %v1286_v32  ;;  %v913_v47 = vsel %vm912_vm10, %v909_v38, %v911_v37 }
  0xa8   : > { %1427 = vmatpush3.msk.msra.mxu0 %vm210_vm3, %v809_v33  ;;  %1409 = vmatprep.mubr.msk.f32.mxu0 %vm1591_vm0, %v1590_v0 }
  0xa9   : > { %1396 = vmatmul.mubr.msk.f32.vlgmr.msra.gmra.mrb[10].mxu1 %vm200_vm4, %v1279_v34  ;;  %1448 = vmatprep.subr.mxu0 %v1590_v0 }
  0xaa   : > { %1416 = vmatpush3.msk.msra.mxu1 %vm210_vm3, %v705_v35  ;;  %1398 = vmatprep.mubr.msk.f32.mxu1 %vm1591_vm0, %v1590_v0  ;;  %v1015_v42 = vpop.permute.xlu1 %1014  ;;  %v1013_v43 = vpop.permute.xlu0 %1012 }
  0xab   : > { %1410 = vmatmul.mubr.msk.f32.gmra.mrb[10].mxu0 %vm200_vm4, %v1287_v36  ;;  %1437 = vmatprep.subr.mxu1 %v1590_v0  ;;  %v1017_v45 = vsel %vm1016_vm9, %v1013_v43, %v1015_v42 }
  0xac   : > { %1412 = vmatprep.mubr.msk.f32.mxu0 %vm1591_vm0, %v1590_v0 }
  0xad   : > { %1399 = vmatmul.mubr.msk.f32.gmra.mrb[12].mxu1 %vm200_vm4, %v1280_v39 }
  0xae   : > { %1401 = vmatprep.mubr.msk.f32.mxu1 %vm1591_vm0, %v1590_v0 }
  0xaf   : > { %1413 = vmatmul.mubr.msk.f32.gmra.mrb[12].mxu0 %vm200_vm4, %v1288_v40 }
  0xb0   : > { %1428 = vmatprep.mubr.msk.f32.mxu0 %vm1591_vm0, %v1590_v0 }
  0xb1   : > { %1402 = vmatmul.mubr.msk.f32.gmra.mrb[14].mxu1 %vm200_vm4, %v1281_v41 }
  0xb2   : > { %1417 = vmatprep.mubr.msk.f32.mxu1 %vm1591_vm0, %v1590_v0 }
  0xb3   : > { %1429 = vmatmul.mubr.msk.f32.vlgmr.msra.gmra.mrb[14].mxu0 %vm200_vm4, %v1300_v44 }
  0xb4   : > { %1449 = vmatpush3.msk.msra.mxu0 %vm210_vm3, %v1017_v45  ;;  %1431 = vmatprep.mubr.msk.f32.mxu0 %vm1591_vm0, %v1590_v0 }
  0xb5   : > { %1418 = vmatmul.mubr.msk.f32.vlgmr.msra.gmra.mrb[16].mxu1 %vm200_vm4, %v1293_v46 }
  0xb6   : > { %1438 = vmatpush3.msk.msra.mxu1 %vm210_vm3, %v913_v47  ;;  %1420 = vmatprep.mubr.msk.f32.mxu1 %vm1591_vm0, %v1590_v0 }
  0xb7   : > { %1432 = vmatmul.mubr.msk.f32.gmra.mrb[16].mxu0 %vm200_vm4, %v1301_v48 }
  0xb8   : > { %1434 = vmatprep.mubr.msk.f32.mxu0 %vm1591_vm0, %v1590_v0 }
  0xb9   : > { %1421 = vmatmul.mubr.msk.f32.gmra.mrb[18].mxu1 %vm200_vm4, %v1294_v49 }
  0xba   : > { %1423 = vmatprep.mubr.msk.f32.mxu1 %vm1591_vm0, %v1590_v0 }
  0xbb   : > { %1435 = vmatmul.mubr.msk.f32.gmra.mrb[18].mxu0 %vm200_vm4, %v1302_v50 }
  0xbc   : > { %1450 = vmatprep.mubr.msk.f32.mxu0 %vm1591_vm0, %v1590_v0 }
  0xbd   : > { %1424 = vmatmul.mubr.msk.f32.gmra.mrb[20].mxu1 %vm200_vm4, %v1295_v51 }
  0xbe   : > { %1439 = vmatprep.mubr.msk.f32.mxu1 %vm1591_vm0, %v1590_v0 }
  0xbf   : > { %1451 = vmatmul.mubr.msk.f32.vlgmr.msra.gmra.mrb[20].mxu0 %vm200_vm4, %v1314_v52 }
  0xc0   : > { %1453 = vmatprep.mubr.msk.f32.mxu0 %vm1591_vm0, %v1590_v0 }
  0xc1   : > { %1440 = vmatmul.mubr.msk.f32.vlgmr.msra.gmra.mrb[22].mxu1 %vm200_vm4, %v1307_v53 }
  0xc2   : > { %1442 = vmatprep.mubr.msk.f32.mxu1 %vm1591_vm0, %v1590_v0 }
  0xc3   : > { %1454 = vmatmul.mubr.msk.f32.gmra.mrb[22].mxu0 %vm200_vm4, %v1315_v54 }
  0xc4   : > { %1456 = vmatprep.mubr.msk.f32.mxu0 %vm1591_vm0, %v1590_v0 }
  0xc5   : > { %1443 = vmatmul.mubr.msk.f32.gmra.mrb[24].mxu1 %vm200_vm4, %v1308_v55 }
  0xc6   : > { %1445 = vmatprep.mubr.msk.f32.mxu1 %vm1591_vm0, %v1590_v0 }
  0xc7   : > { %1457 = vmatmul.mubr.msk.f32.gmra.mrb[24].mxu0 %vm200_vm4, %v1316_v56 }
  0xc9   : > { %1446 = vmatmul.mubr.msk.f32.gmra.mrb[26].mxu1 %vm200_vm4, %v1309_v57 }
 0x168   : > { %v284_v58 = vpop.f32.mrb[0].mxu1 }
 0x169   : > { %v1367_v59 = vpop.f32.mrb[1].mxu1  ;;  %v279_v60 = vpop.f32.mrb[0].mxu0 }
 0x16a   : > { %v1364_v61 = vpop.f32.mrb[1].mxu0  ;;  %v1118_v59 = vpop.permute.xlu0 %1117 }
 0x16c   : > { %v289_v62 = vpop.f32.mrb[2].mxu1 }
 0x16d   : > { %v1370_v63 = vpop.f32.mrb[3].mxu1  ;;  %v471_v1 = vpop.f32.mrb[2].mxu0 }
 0x16e   : > { %v1386_v2 = vpop.f32.mrb[3].mxu0 }
 0x170   : > { %v370_v3 = vpop.f32.mrb[4].mxu1 }
 0x171   : > { %v371_v4 = vadd.f32 %v370_v3, %v279_v60  ;;  %v1375_v5 = vpop.f32.mrb[5].mxu1 }
 0x172   : > { %v476_v0 = vpop.f32.mrb[4].mxu0 }
 0x173   : > { %v485_v6 = vadd.f32 %v471_v1, %v371_v4  ;;  %v1389_v7 = vpop.f32.mrb[5].mxu0  ;;  %v1123_v4 = vpop.permute.xlu1 %1122 }
 0x174   : > { %v375_v8 = vpop.f32.mrb[6].mxu1 }
 0x175   : > { %v376_v9 = vadd.f32 %v375_v8, %v284_v58  ;;  %v1378_v10 = vpop.f32.mrb[7].mxu1 }
 0x176   : > { %v481_v11 = vpop.f32.mrb[6].mxu0 }
 0x177   : > { %v486_v12 = vadd.f32 %v476_v0, %v376_v9  ;;  %v1392_v13 = vpop.f32.mrb[7].mxu0 }
 0x178   : > { %v380_v14 = vpop.f32.mrb[8].mxu1 }
 0x179   : > { %v381_v15 = vadd.f32 %v380_v14, %v289_v62  ;;  %v1381_v16 = vpop.f32.mrb[9].mxu1 }
 0x17a   : > { %v679_v17 = vpop.f32.mrb[8].mxu0 }
 0x17b   : > { %v487_v18 = vadd.f32 %v481_v11, %v381_v15  ;;  %v1408_v19 = vpop.f32.mrb[9].mxu0 }
 0x17c   : > { %v575_v20 = vpop.f32.mrb[10].mxu1 }
 0x17d   : > { %v589_v21 = vadd.f32 %v575_v20, %v485_v6  ;;  %v1397_v22 = vpop.f32.mrb[11].mxu1 }
 0x17e   : > { %v684_v23 = vpop.f32.mrb[10].mxu0 }
 0x17f   : > { %v693_v24 = vadd.f32 %v679_v17, %v589_v21  ;;  %v1411_v25 = vpop.f32.mrb[11].mxu0 }
 0x180   : > { %v580_v26 = vpop.f32.mrb[12].mxu1 }
 0x181   : > { %v590_v27 = vadd.f32 %v580_v26, %v486_v12  ;;  %v1400_v28 = vpop.f32.mrb[13].mxu1  ;;  %v1128_v12 = vpop.permute.xlu1 %1127 }
 0x182   : > { %v689_v29 = vpop.f32.mrb[12].mxu0 }
 0x183   : > { %v694_v30 = vadd.f32 %v684_v23, %v590_v27  ;;  %v1414_v31 = vpop.f32.mrb[13].mxu0 }
 0x184   : > { %v585_v32 = vpop.f32.mrb[14].mxu1 }
 0x185   : > { %v591_v33 = vadd.f32 %v585_v32, %v487_v18  ;;  %v1403_v34 = vpop.f32.mrb[15].mxu1 }
 0x186   : > { %v887_v35 = vpop.f32.mrb[14].mxu0 }
 0x187   : > { %v695_v36 = vadd.f32 %v689_v29, %v591_v33  ;;  %v1430_v37 = vpop.f32.mrb[15].mxu0 }
 0x188   : > { %v783_v38 = vpop.f32.mrb[16].mxu1 }
 0x189   : > { %v797_v39 = vadd.f32 %v783_v38, %v693_v24  ;;  %v1419_v40 = vpop.f32.mrb[17].mxu1 }
 0x18a   : > { %v892_v41 = vpop.f32.mrb[16].mxu0 }
 0x18b   : > { %v901_v42 = vadd.f32 %v887_v35, %v797_v39  ;;  %v1433_v43 = vpop.f32.mrb[17].mxu0 }
 0x18c   : > { %v788_v44 = vpop.f32.mrb[18].mxu1 }
 0x18d   : > { %v798_v45 = vadd.f32 %v788_v44, %v694_v30  ;;  %v1422_v46 = vpop.f32.mrb[19].mxu1 }
 0x18e   : > { %v897_v47 = vpop.f32.mrb[18].mxu0 }
 0x18f   : > { %v902_v48 = vadd.f32 %v892_v41, %v798_v45  ;;  %v1436_v49 = vpop.f32.mrb[19].mxu0 }
 0x190   : > { %v793_v50 = vpop.f32.mrb[20].mxu1 }
 0x191   : > { %v799_v51 = vadd.f32 %v793_v50, %v695_v36  ;;  %v1425_v52 = vpop.f32.mrb[21].mxu1 }
 0x192   : > { %v1095_v53 = vpop.f32.mrb[20].mxu0 }
 0x193   : > { %v903_v54 = vadd.f32 %v897_v47, %v799_v51  ;;  %v1452_v55 = vpop.f32.mrb[21].mxu0 }
 0x194   : > { %v991_v56 = vpop.f32.mrb[22].mxu1 }
 0x195   : > { %v1005_v57 = vadd.f32 %v991_v56, %v901_v42  ;;  %v1441_v58 = vpop.f32.mrb[23].mxu1 }
 0x196   : > { %v1100_v60 = vpop.f32.mrb[22].mxu0 }
 0x197   : > { %v1109_v61 = vadd.f32 %v1095_v53, %v1005_v57  ;;  %v1455_v62 = vpop.f32.mrb[23].mxu0 }
 0x198   : > { %v996_v63 = vpop.f32.mrb[24].mxu1 }
 0x199   : > { %v1006_v1 = vadd.f32 %v996_v63, %v902_v48  ;;  %v1130_v2 = vadd.f32 %v1118_v59, %v1109_v61  ;;  %v1444_v3 = vpop.f32.mrb[25].mxu1 }
 0x19a   : > { %v1105_v5 = vpop.f32.mrb[24].mxu0 }
 0x19b   : > { %1133 = vst [vmem:[%s173_s26] sm:$0xff] %v1130_v2  ;;  %v1110_v0 = vadd.f32 %v1100_v60, %v1006_v1  ;;  %v1458_v6 = vpop.f32.mrb[25].mxu0 }
 0x19c   : > { %v1001_v7 = vpop.f32.mrb[26].mxu1 }
 0x19d   : > { %v1131_v8 = vadd.f32 %v1123_v4, %v1110_v0  ;;  %v1007_v9 = vadd.f32 %v1001_v7, %v903_v54  ;;  %v1447_v10 = vpop.f32.mrb[27].mxu1  ;;  %1142 = sbr.rel (!%p1667_p5) target bundleno = 428 (0x1ac), region = 36 }
 0x19f   : > { %1134 = vst [vmem:[%s173_s26 + $0x8] sm:$0xff] %v1131_v8  ;;  %v1111_v11 = vadd.f32 %v1105_v5, %v1007_v9 }
 0x1a1   : > { %v1132_v13 = vadd.f32 %v1128_v12, %v1111_v11 }
 0x1a2   : > { %v1178_v14 = vld [vmem:[%s173_s26] sm:$0xff] (%p1667_p5) }
 0x1a3   : > { %1135 = vst [vmem:[%s173_s26 + $0x10] sm:$0xf] %v1132_v13  ;;  %1179 = vst [vmem:[%s1146_s5] sm:$0xff] (%p1667_p5), %v1178_v14 }
 0x1a6   : > { %v1180_v15 = vld [vmem:[%s173_s26 + $0x8] sm:$0xff] }
 0x1a7   : > { %1181 = vst [vmem:[%s1146_s5 + $0x10] sm:$0xff] %v1180_v15 }
 0x1aa   : > { %v1182_v16 = vld [vmem:[%s173_s26 + $0x10] sm:$0xff] }
 0x1ab   : > { %1183 = vst [vmem:[%s1146_s5 + $0x20] sm:$0xff] %v1182_v16 }
 0x1ac PF: > { %s13_s18 = sadd.s32 1, %s1588_s18   ;;  %s1911_s12 = smov %s1568_s13 }
 0x1ad   : > { %p10_p10 = scmp.ge.s32.totalorder %s13_s18, 6   ;;  %s1912_s13 = smov %s1678_s27 }
 0x1ae   : > { %s1913_s14 = smov %s1580_s16  ;;  %s1914_s15 = smov %s1584_s17 }
 0x1af   : > { %s1915_s16 = smov %s1918_s19  ;;  %s1916_s17 = smov %s1922_s20 }
 0x1b0   :  { %12 = sbr.rel (!%p10_p10) target bundleno = 4 (0x4), region = 109 }

</bundles_post_ra>
